<compile_context>
chip_gen: v5e
topology: v5e:2x2
jax: 0.10.0
libtpu: 0.0.40
codegen_flags: <defaults>
</compile_context>

<pallas_src>
import functools

import numpy as np
import jax
import jax.numpy as jnp
from jax.experimental import pallas as pl
from jax.experimental.pallas import tpu as pltpu

LRELU = 0.2


# --------------------------------------------------------------- kernels ----

def _mapping_styles_kernel(z_ref, w0_ref, b0_ref, w1_ref, b1_ref,
                           ws_ref, bs_ref, wsq_ref, s_out_ref, d_out_ref):
    """Mapping MLP + all per-conv style vectors + all per-conv demod factors."""
    h = jnp.dot(z_ref[...], w0_ref[...], preferred_element_type=jnp.float32) + b0_ref[...]
    h = jnp.where(h >= 0, h, LRELU * h)
    h = jnp.dot(h, w1_ref[...], preferred_element_type=jnp.float32) + b1_ref[...]
    h = jnp.where(h >= 0, h, LRELU * h)
    s = jnp.dot(h, ws_ref[...], preferred_element_type=jnp.float32) + bs_ref[...]
    # demod[b, o] = rsqrt(sum_i s[b,i]^2 * (scale^2 * sum_kk w[o,i,kh,kw]^2) + 1e-8)
    # for every conv at once, via a block-diagonal wsq matrix.
    d = jax.lax.rsqrt(
        jnp.dot(s * s, wsq_ref[...], preferred_element_type=jnp.float32) + 1e-8)
    s_out_ref[...] = s
    d_out_ref[...] = d


def _modconv_kernel(x_ref, w_ref, d_ref, *rest, act, has_noise):
    # x_ref: (1, TM, CK)  bf16 im2col patches of (x * style)
    # w_ref: (CK, Cout)   bf16 base weight * scale (resident across the grid)
    # d_ref: (1, 1, Cout) f32 per-sample demodulation factor
    if has_noise:
        n_ref, ns_ref, o_ref = rest        # (1, TM, Cout), SMEM (1,), output
    else:
        (o_ref,) = rest
    y = jnp.dot(x_ref[0], w_ref[...], preferred_element_type=jnp.float32)
    y = y * d_ref[0]
    if has_noise:
        y = y + ns_ref[0] * n_ref[0]
    if act:
        y = jnp.where(y >= 0, y, LRELU * y)
    o_ref[0] = y
    # NOTE: ModulatedConv2d.conv.bias is never passed to F.conv2d in the
    # reference forward, so no bias term here.


def _conv_bias_kernel(x_ref, w_ref, b_ref, o_ref):
    # plain conv (upsample path): (1, TM, CK) bf16 @ (CK, Cout) bf16 + bias
    y = jnp.dot(x_ref[0], w_ref[...], preferred_element_type=jnp.float32)
    o_ref[0] = y + b_ref[...]


def _rgb_resize_kernel(rgb_ref, a2t_ref, *rest, add_prev, do_tanh):
    # rgb_ref: (1, 3, hw); a2t_ref: (hw, F*F) == kron(A, A)^T bilinear operator.
    # Fused: bilinear resize + running rgb accumulation (+ final tanh).
    if add_prev:
        prev_ref, o_ref = rest
    else:
        (o_ref,) = rest
    y = jnp.dot(rgb_ref[0], a2t_ref[...], preferred_element_type=jnp.float32)
    if add_prev:
        y = y + prev_ref[0]
    if do_tanh:
        y = jnp.tanh(y)
    o_ref[0] = y


# -------------------------------------------------------------- wrappers ----

def _row_tile(hw):
    tm = min(hw, 256)
    return tm if hw % tm == 0 else hw


def im2col_nhwc(x, k, pad, out_dtype=jnp.bfloat16):
    """x: [B,H,W,C] -> patches [B, H*W, k*k*C]; flat index = (dh*k + dw)*C + c."""
    B, H, W, C = x.shape
    if k == 1:
        return x.reshape(B, H * W, C).astype(out_dtype)
    xp = jnp.pad(x, ((0, 0), (pad, pad), (pad, pad), (0, 0)))
    cols = [xp[:, dh:dh + H, dw:dw + W, :] for dh in range(k) for dw in range(k)]
    patches = jnp.concatenate(cols, axis=-1)           # [B, H, W, k*k*C]
    return patches.reshape(B, H * W, k * k * C).astype(out_dtype)


def mapping_and_styles(params, z):
    B = z.shape[0]
    S = params["ws_all"].shape[1]
    D = params["wsq_bd"].shape[1]
    return pl.pallas_call(
        _mapping_styles_kernel,
        out_shape=(jax.ShapeDtypeStruct((B, S), jnp.float32),
                   jax.ShapeDtypeStruct((B, D), jnp.float32)),
    )(z, params["map_w0"], params["map_b0"], params["map_w1"], params["map_b1"],
      params["ws_all"], params["bs_all"], params["wsq_bd"])


def modulated_conv2d(conv, x, styles, demods, noise=None, noise_scale=None, act=True):
    """x: [B,H,W,Cin] NHWC -> [B,H,W,Cout] NHWC (f32)."""
    B, H, W, Cin = x.shape
    k, Cout = conv["k"], conv["cout"]
    HW, CK = H * W, k * k * Cin
    s = styles[:, conv["s_off"]:conv["s_off"] + Cin]           # [B, Cin]
    d = demods[:, conv["d_off"]:conv["d_off"] + Cout]          # [B, Cout]
    x_mod = x * s[:, None, None, :]                            # modulate activations (f32)
    patches = im2col_nhwc(x_mod, k, (k - 1) // 2)              # bf16 MXU operand
    demod3 = d.reshape(B, 1, Cout)
    TM = _row_tile(HW)
    has_noise = noise is not None
    inputs = [patches, conv["w_flat"], demod3]
    in_specs = [
        pl.BlockSpec((1, TM, CK), lambda b, m: (b, m, 0)),
        pl.BlockSpec((CK, Cout), lambda b, m: (0, 0)),         # weight stays resident
        pl.BlockSpec((1, 1, Cout), lambda b, m: (b, 0, 0)),
    ]
    if has_noise:
        inputs += [noise.reshape(B, HW, Cout), noise_scale]
        in_specs += [
            pl.BlockSpec((1, TM, Cout), lambda b, m: (b, m, 0)),
            pl.BlockSpec(memory_space=pltpu.MemorySpace.SMEM),
        ]
    out = pl.pallas_call(
        functools.partial(_modconv_kernel, act=act, has_noise=has_noise),
        grid=(B, HW // TM),
        in_specs=in_specs,
        out_specs=pl.BlockSpec((1, TM, Cout), lambda b, m: (b, m, 0)),
        out_shape=jax.ShapeDtypeStruct((B, HW, Cout), jnp.float32),
        compiler_params=pltpu.CompilerParams(
            dimension_semantics=("parallel", "parallel")),
    )(*inputs)
    return out.reshape(B, H, W, Cout)


def conv2d_bias(x, w_flat, bias, k):
    """Plain conv with bias (post nearest-upsample). x NHWC -> NHWC."""
    B, H, W, Cin = x.shape
    CK, Cout = w_flat.shape
    HW = H * W
    patches = im2col_nhwc(x, k, (k - 1) // 2)
    TM = _row_tile(HW)
    out = pl.pallas_call(
        _conv_bias_kernel,
        grid=(B, HW // TM),
        in_specs=[pl.BlockSpec((1, TM, CK), lambda b, m: (b, m, 0)),
                  pl.BlockSpec((CK, Cout), lambda b, m: (0, 0)),
                  pl.BlockSpec((1, Cout), lambda b, m: (0, 0))],
        out_specs=pl.BlockSpec((1, TM, Cout), lambda b, m: (b, m, 0)),
        out_shape=jax.ShapeDtypeStruct((B, HW, Cout), jnp.float32),
        compiler_params=pltpu.CompilerParams(
            dimension_semantics=("parallel", "parallel")),
    )(patches, w_flat, bias)
    return out.reshape(B, H, W, Cout)


def rgb_resize_accumulate(rgb_chw, a2t, prev=None, do_tanh=False):
    """rgb_chw: [B,3,hw]; a2t: [hw, F*F]. Returns accumulated [B,3,F*F]."""
    B, C3, hw = rgb_chw.shape
    FF = a2t.shape[1]
    add_prev = prev is not None
    inputs = [rgb_chw, a2t]
    in_specs = [pl.BlockSpec((1, C3, hw), lambda b: (b, 0, 0)),
                pl.BlockSpec((hw, FF), lambda b: (0, 0))]
    if add_prev:
        inputs.append(prev)
        in_specs.append(pl.BlockSpec((1, C3, FF), lambda b: (b, 0, 0)))
    return pl.pallas_call(
        functools.partial(_rgb_resize_kernel, add_prev=add_prev, do_tanh=do_tanh),
        grid=(B,),
        in_specs=in_specs,
        out_specs=pl.BlockSpec((1, C3, FF), lambda b: (b, 0, 0)),
        out_shape=jax.ShapeDtypeStruct((B, C3, FF), jnp.float32),
        compiler_params=pltpu.CompilerParams(dimension_semantics=("parallel",)),
    )(*inputs)


# ------------------------------------------------------------------ init ----

def bilinear_matrix(out_size, in_size):
    # nn.Upsample(mode='bilinear', align_corners=False) 1-D interpolation matrix
    A = np.zeros((out_size, in_size), dtype=np.float32)
    scale = in_size / out_size
    for o in range(out_size):
        src = max((o + 0.5) * scale - 0.5, 0.0)
        i0 = min(int(np.floor(src)), in_size - 1)
        i1 = min(i0 + 1, in_size - 1)
        frac = src - i0
        A[o, i0] += 1.0 - frac
        A[o, i1] += frac
    return A


def init_modconv(key, cin, cout, k, w_dim):
    k1, k2, k3 = jax.random.split(key, 3)
    fan_in = cin * k * k
    std = np.sqrt(2.0 / ((1.0 + LRELU ** 2) * fan_in))       # kaiming_normal_(a=0.2)
    weight = jax.random.normal(k1, (cout, cin, k, k), jnp.float32) * std
    scale = np.float32(1.0 / np.sqrt(fan_in))
    w_scaled = weight * scale
    # flat weight in im2col order [(dh,dw) major, cin minor] x cout; bf16 for MXU
    w_flat = jnp.transpose(w_scaled, (2, 3, 1, 0)).reshape(k * k * cin, cout)
    w_flat = w_flat.astype(jnp.bfloat16)
    wsq = jnp.sum(w_scaled * w_scaled, axis=(2, 3)).T        # [cin, cout], f32
    return dict(
        k=k, cin=cin, cout=cout, w_flat=w_flat, wsq=wsq,
        style_w=jax.random.normal(k2, (w_dim, cin), jnp.float32) / np.sqrt(w_dim),
        style_b=jax.random.normal(k3, (cin,), jnp.float32) * 0.01,
    )


def init_generator(key, z_dim, w_dim, num_channels, final_res):
    n_blocks = len(num_channels) - 1
    keys = list(jax.random.split(key, 3 + 4 * n_blocks))
    ki = iter(keys)
    params = dict(
        map_w0=jax.random.normal(next(ki), (z_dim, w_dim), jnp.float32) / np.sqrt(z_dim),
        map_b0=jnp.zeros((1, w_dim), jnp.float32),
        map_w1=jax.random.normal(next(ki), (w_dim, w_dim), jnp.float32) / np.sqrt(w_dim),
        map_b1=jnp.zeros((1, w_dim), jnp.float32),
        const=jax.random.normal(next(ki), (1, 4, 4, num_channels[0]), jnp.float32),
        final_res=final_res,
        blocks=[],
    )
    all_convs = []
    for i in range(n_blocks):
        cin, cout = num_channels[i], num_channels[i + 1]
        res = 4 * 2 ** (i + 1)
        conv1 = init_modconv(next(ki), cin, cout, 3, w_dim)
        conv2 = init_modconv(next(ki), cout, cout, 3, w_dim)
        to_rgb = init_modconv(next(ki), cout, 3, 1, w_dim)
        up_w = jax.random.normal(next(ki), (cout, cout, 3, 3), jnp.float32) / np.sqrt(cout * 9)
        up_w_flat = jnp.transpose(up_w, (2, 3, 1, 0)).reshape(9 * cout, cout)
        up_w_flat = up_w_flat.astype(jnp.bfloat16)
        A = bilinear_matrix(final_res, res)                   # [F, res]
        a2t = jnp.asarray(np.kron(A, A).T)                    # [res*res, F*F]
        params["blocks"].append(dict(
            conv1=conv1, conv2=conv2, to_rgb=to_rgb,
            noise_scale1=jnp.zeros((1,), jnp.float32),
            noise_scale2=jnp.zeros((1,), jnp.float32),
            up_w_flat=up_w_flat, up_b=jnp.zeros((1, cout), jnp.float32),
            resolution=res, a2t=a2t))
        all_convs += [conv1, conv2, to_rgb]
    # pack every conv's style projection and demod matrix into single operands
    s_off = d_off = 0
    for c in all_convs:
        c["s_off"], c["d_off"] = s_off, d_off
        s_off += c["cin"]
        d_off += c["cout"]
    D_total = d_off
    params["ws_all"] = jnp.concatenate([c["style_w"] for c in all_convs], axis=1)
    params["bs_all"] = jnp.concatenate([c["style_b"] for c in all_convs]).reshape(1, s_off)
    rows = []
    for c in all_convs:
        row = jnp.zeros((c["cin"], D_total), jnp.float32)
        rows.append(row.at[:, c["d_off"]:c["d_off"] + c["cout"]].set(c["wsq"]))
    params["wsq_bd"] = jnp.concatenate(rows, axis=0)          # block-diagonal [S, D]
    return params


# --------------------------------------------------------------- forward ----

def generator_forward(params, z, noises, truncation_psi=1.0):
    # TODO(synk): training-mode w_avg EMA buffer update and truncation_psi < 1
    # blending are stateful; only the eval path (truncation_psi == 1.0) is done.
    del truncation_psi
    styles, demods = mapping_and_styles(params, z)
    B = z.shape[0]
    x = jnp.tile(params["const"], (B, 1, 1, 1))               # NHWC [B,4,4,C0]
    rgb = None
    n_blocks = len(params["blocks"])
    for bi, (blk, (n1, n2)) in enumerate(zip(params["blocks"], noises)):
        x = modulated_conv2d(blk["conv1"], x, styles, demods,
                             noise=n1, noise_scale=blk["noise_scale1"], act=True)
        x = modulated_conv2d(blk["conv2"], x, styles, demods,
                             noise=n2, noise_scale=blk["noise_scale2"], act=True)
        if blk["resolution"] > 4:
            x = jnp.repeat(jnp.repeat(x, 2, axis=1), 2, axis=2)   # nearest 2x (NHWC)
            x = conv2d_bias(x, blk["up_w_flat"], blk["up_b"], 3)
        rgb_i = modulated_conv2d(blk["to_rgb"], x, styles, demods, act=False)
        rgb_chw = jnp.transpose(rgb_i.reshape(B, -1, 3), (0, 2, 1))   # [B,3,hw] (tiny)
        rgb = rgb_resize_accumulate(rgb_chw, blk["a2t"], prev=rgb,
                                    do_tanh=(bi == n_blocks - 1))
    F_ = params["final_res"]
    return rgb.reshape(B, 3, F_, F_)          # NCHW, matches the torch reference


# ------------------------------------------------------------------ main ----

if __name__ == "__main__":
    B = 2
    z_dim = w_dim = 32
    num_channels = [16, 16, 8]     # scaled-down version of the default config
    final_res = 16

    key = jax.random.PRNGKey(0)
    kp, kz, kn = jax.random.split(key, 3)
    params = init_generator(kp, z_dim, w_dim, num_channels, final_res)
    z = jax.random.normal(kz, (B, z_dim), jnp.float32)

    # Per-block noise (torch.randn in the reference forward), generated
    # deterministically here at each block's input resolution, NHWC layout.
    noises = []
    nkeys = jax.random.split(kn, 2 * (len(num_channels) - 1))
    for i in range(len(num_channels) - 1):
        cout = num_channels[i + 1]
        h = 4 * 2 ** i
        noises.append((
            jax.random.normal(nkeys[2 * i], (B, h, h, cout), jnp.float32),
            jax.random.normal(nkeys[2 * i + 1], (B, h, h, cout), jnp.float32),
        ))

    out = generator_forward(params, z, noises)
    out = jax.block_until_ready(out)
    assert out.shape == (B, 3, final_res, final_res), out.shape
    assert bool(jnp.all(jnp.isfinite(out)))
    print("KERNEL_OK")
</pallas_src>

<mosaic_0001>
module attributes {stable_mosaic.version = 11 : i64} {
  func.func @_mapping_styles_kernel(%arg0: memref<2x32xf32, #tpu.memory_space<vmem>>, %arg1: memref<32x32xf32, #tpu.memory_space<vmem>>, %arg2: memref<1x32xf32, #tpu.memory_space<vmem>>, %arg3: memref<32x32xf32, #tpu.memory_space<vmem>>, %arg4: memref<1x32xf32, #tpu.memory_space<vmem>>, %arg5: memref<32x80xf32, #tpu.memory_space<vmem>>, %arg6: memref<1x80xf32, #tpu.memory_space<vmem>>, %arg7: memref<80x54xf32, #tpu.memory_space<vmem>>, %arg8: memref<2x80xf32, #tpu.memory_space<vmem>>, %arg9: memref<2x54xf32, #tpu.memory_space<vmem>>) attributes {dimension_semantics = [], scalar_prefetch = 0 : i64, scratch_operands = 0 : i64, tpu.core_type = #tpu.core_type<tc>} {
    %c0 = arith.constant 0 : index
    %c0_0 = arith.constant 0 : index
    %0 = vector.load %arg0[%c0, %c0_0] : memref<2x32xf32, #tpu.memory_space<vmem>>, vector<2x32xf32>
    %c0_1 = arith.constant 0 : index
    %c0_2 = arith.constant 0 : index
    %1 = vector.load %arg1[%c0_1, %c0_2] : memref<32x32xf32, #tpu.memory_space<vmem>>, vector<32x32xf32>
    %cst = arith.constant dense<0.000000e+00> : vector<2x32xf32>
    %2 = tpu.matmul %0, %1, %cst {dimension_numbers = #tpu.dot_dimension_numbers<[1], [0], [0], [1], [0, 0, 1, 1], [], []>} : vector<2x32xf32>, vector<32x32xf32>, vector<2x32xf32> -> vector<2x32xf32>
    %c0_3 = arith.constant 0 : index
    %c0_4 = arith.constant 0 : index
    %3 = vector.load %arg2[%c0_3, %c0_4] : memref<1x32xf32, #tpu.memory_space<vmem>>, vector<1x32xf32>
    %4 = vector.broadcast %3 : vector<1x32xf32> to vector<2x32xf32>
    %5 = arith.addf %2, %4 : vector<2x32xf32>
    %cst_5 = arith.constant 0.000000e+00 : f32
    %6 = vector.broadcast %cst_5 : f32 to vector<2x32xf32>
    %7 = arith.cmpf oge, %5, %6 : vector<2x32xf32>
    %cst_6 = arith.constant 2.000000e-01 : f32
    %8 = vector.broadcast %cst_6 : f32 to vector<2x32xf32>
    %9 = arith.mulf %8, %5 : vector<2x32xf32>
    %10 = arith.select %7, %5, %9 : vector<2x32xi1>, vector<2x32xf32>
    %c0_7 = arith.constant 0 : index
    %c0_8 = arith.constant 0 : index
    %11 = vector.load %arg3[%c0_7, %c0_8] : memref<32x32xf32, #tpu.memory_space<vmem>>, vector<32x32xf32>
    %cst_9 = arith.constant dense<0.000000e+00> : vector<2x32xf32>
    %12 = tpu.matmul %10, %11, %cst_9 {dimension_numbers = #tpu.dot_dimension_numbers<[1], [0], [0], [1], [0, 0, 1, 1], [], []>} : vector<2x32xf32>, vector<32x32xf32>, vector<2x32xf32> -> vector<2x32xf32>
    %c0_10 = arith.constant 0 : index
    %c0_11 = arith.constant 0 : index
    %13 = vector.load %arg4[%c0_10, %c0_11] : memref<1x32xf32, #tpu.memory_space<vmem>>, vector<1x32xf32>
    %14 = vector.broadcast %13 : vector<1x32xf32> to vector<2x32xf32>
    %15 = arith.addf %12, %14 : vector<2x32xf32>
    %cst_12 = arith.constant 0.000000e+00 : f32
    %16 = vector.broadcast %cst_12 : f32 to vector<2x32xf32>
    %17 = arith.cmpf oge, %15, %16 : vector<2x32xf32>
    %cst_13 = arith.constant 2.000000e-01 : f32
    %18 = vector.broadcast %cst_13 : f32 to vector<2x32xf32>
    %19 = arith.mulf %18, %15 : vector<2x32xf32>
    %20 = arith.select %17, %15, %19 : vector<2x32xi1>, vector<2x32xf32>
    %c0_14 = arith.constant 0 : index
    %c0_15 = arith.constant 0 : index
    %21 = vector.load %arg5[%c0_14, %c0_15] : memref<32x80xf32, #tpu.memory_space<vmem>>, vector<32x80xf32>
    %cst_16 = arith.constant dense<0.000000e+00> : vector<2x80xf32>
    %22 = tpu.matmul %20, %21, %cst_16 {dimension_numbers = #tpu.dot_dimension_numbers<[1], [0], [0], [1], [0, 0, 1, 1], [], []>} : vector<2x32xf32>, vector<32x80xf32>, vector<2x80xf32> -> vector<2x80xf32>
    %c0_17 = arith.constant 0 : index
    %c0_18 = arith.constant 0 : index
    %23 = vector.load %arg6[%c0_17, %c0_18] : memref<1x80xf32, #tpu.memory_space<vmem>>, vector<1x80xf32>
    %24 = vector.broadcast %23 : vector<1x80xf32> to vector<2x80xf32>
    %25 = arith.addf %22, %24 : vector<2x80xf32>
    %26 = arith.mulf %25, %25 : vector<2x80xf32>
    %c0_19 = arith.constant 0 : index
    %c0_20 = arith.constant 0 : index
    %27 = vector.load %arg7[%c0_19, %c0_20] : memref<80x54xf32, #tpu.memory_space<vmem>>, vector<80x54xf32>
    %cst_21 = arith.constant dense<0.000000e+00> : vector<2x54xf32>
    %28 = tpu.matmul %26, %27, %cst_21 {dimension_numbers = #tpu.dot_dimension_numbers<[1], [0], [0], [1], [0, 0, 1, 1], [], []>} : vector<2x80xf32>, vector<80x54xf32>, vector<2x54xf32> -> vector<2x54xf32>
    %cst_22 = arith.constant 9.99999993E-9 : f32
    %29 = vector.broadcast %cst_22 : f32 to vector<2x54xf32>
    %30 = arith.addf %28, %29 : vector<2x54xf32>
    %31 = math.rsqrt %30 : vector<2x54xf32>
    %c0_23 = arith.constant 0 : index
    %c0_24 = arith.constant 0 : index
    %32 = vector.load %arg8[%c0_23, %c0_24] : memref<2x80xf32, #tpu.memory_space<vmem>>, vector<2x80xf32>
    tpu.vector_store %arg8[%c0_23, %c0_24], %25 {strides = array<i32>} : memref<2x80xf32, #tpu.memory_space<vmem>>, vector<2x80xf32>,
    %c0_25 = arith.constant 0 : index
    %c0_26 = arith.constant 0 : index
    %33 = vector.load %arg9[%c0_25, %c0_26] : memref<2x54xf32, #tpu.memory_space<vmem>>, vector<2x54xf32>
    tpu.vector_store %arg9[%c0_25, %c0_26], %31 {strides = array<i32>} : memref<2x54xf32, #tpu.memory_space<vmem>>, vector<2x54xf32>,
    return
  }
}

</mosaic_0001>

<bundles_post_ra>
// kernel: tpu_custom_call.1
= control target key start
LH: loop header
LB: loop body
LE: loop exit
PB: predicated region body
PF: predicated region fallthrough
CT: control target
= control target key end

     0   :  { %15 = vsyncpa [#allocation3], 0  ;;  %s417_s0 = inlined_call_operand.vmem [shape: f32[2,32], index: 0, kind: input, shape index: {}]   ;;  %s418_s1 = inlined_call_operand.vmem [shape: f32[32,32], index: 1, kind: input, shape index: {}]   ;;  %s419_s2 = inlined_call_operand.vmem [shape: f32[1,32], index: 2, kind: input, shape index: {}]   ;;  %s420_s3 = inlined_call_operand.vmem [shape: f32[32,32], index: 3, kind: input, shape index: {}]   ;;  %s421_s4 = inlined_call_operand.vmem [shape: f32[1,32], index: 4, kind: input, shape index: {}]   ;;  %s422_s5 = inlined_call_operand.vmem [shape: f32[32,80], index: 5, kind: input, shape index: {}]   ;;  %s423_s6 = inlined_call_operand.vmem [shape: f32[1,80], index: 6, kind: input, shape index: {}]   ;;  %s424_s7 = inlined_call_operand.vmem [shape: f32[80,54], index: 7, kind: input, shape index: {}]   ;;  %s425_s8 = inlined_call_operand.hbm [shape: f32[2,80], index: 8, kind: output, shape index: {0}]   ;;  %s426_s9 = inlined_call_operand.hbm [shape: f32[2,54], index: 9, kind: output, shape index: {1}]  }
   0x1   :  { %v37_v0 = vld [vmem:[%s418_s1 + $0x18] sm:$0xff]  ;;  %v36_v1 = vld [vmem:[%s418_s1 + $0x10] sm:$0xff]  ;;  %v35_v3 = vld [vmem:[%s418_s1 + $0x8] sm:$0xff] }
   0x2   :  { %58 = vmatpush.msra.mxu0 %v37_v0  ;;  %v72_v2 = vld [vmem:[%s420_s3 + $0x18] sm:$0xff] }
   0x3   :  { %92 = vmatpush.msra.mxu1 %v72_v2 }
   0x4   :  { %59 = vmatpush.msra.mxu0 %v36_v1 }
   0x5   :  { %16 = vsyncpa [#allocation5], 0  ;;  %v34_v4 = vld [vmem:[%s418_s1] sm:$0xff]  ;;  %vm42_vm0 = vcmask 261120   ;;  %v71_v6 = vld [vmem:[%s420_s3 + $0x10] sm:$0xff]  ;;  %vm179_vm3 = vcmask 648192  }
   0x6   :  { %60 = vmatpush.msra.mxu0 %v35_v3  ;;  %v33_v5 = vld [vmem:[%s417_s0] sm:$0x3]  ;;  %93 = vmatpush.msra.mxu1 %v71_v6  ;;  %v70_v7 = vld [vmem:[%s420_s3 + $0x8] sm:$0xff]  ;;  %v106_v9 = vld [vmem:[%s422_s5 + $0x18] sm:$0xff]  ;;  %vm145_vm4 = vcmask 654336   ;;  %s190_s12 = sshll.u32 %s425_s8, 4  ;;  %s191_s12 = int_to_ptr.hbm [resolvable:$true] %s190_s12 }
   0x7   :  { %v69_v8 = vld [vmem:[%s420_s3] sm:$0xff]  ;;  %126 = vmatpush.msra.mxu2 %v106_v9  ;;  %v105_v15 = vld [vmem:[%s422_s5 + $0x10] sm:$0xff]  ;;  %v104_v16 = vld [vmem:[%s422_s5 + $0x8] sm:$0xff]  ;;  %s201_s8 = sshll.u32 %s426_s9, 4  ;;  %vm181_vm7 = vcmask 435200   ;;  %s202_s8 = int_to_ptr.hbm [resolvable:$true] %s201_s8 }
   0x8   :  { %61 = vmatpush.msra.mxu0 %v34_v4  ;;  %94 = vmatpush.msra.mxu1 %v70_v7  ;;  %v221_v10 = vld [vmem:[%s419_s2] ss:$0 sm:$0xff]  ;;  %v144_v18 = vld [vmem:[%s424_s7 + $0x48] sm:$0xff]  ;;  %v142_v20 = vld [vmem:[%s424_s7 + $0x38] sm:$0xff]  ;;  %s278_s2 = smov [#allocation2]  }
   0x9   :  { %215 = vmatmul.msk.f32.vlgmr.msra.gmra.mxu0 %vm42_vm0, %v33_v5  ;;  %127 = vmatpush.msra.mxu2 %v105_v15  ;;  %v103_v17 = vld [vmem:[%s422_s5] sm:$0xff]  ;;  %v141_v21 = vld [vmem:[%s424_s7 + $0x30] sm:$0xff]  ;;  %v140_v22 = vld [vmem:[%s424_s7 + $0x28] sm:$0xff]  ;;  %s188_s13 = sshll.u32 %s278_s2, 4  ;;  %s189_s13 = int_to_ptr.vmem [resolvable:$true] %s188_s13 }
   0xa   :  { %95 = vmatpush.msra.mxu1 %v69_v8  ;;  %v143_v19 = vld [vmem:[%s424_s7 + $0x40] sm:$0xff]  ;;  %155 = vmatpush.msra.mxu3 %v144_v18  ;;  %v138_v24 = vld [vmem:[%s424_s7 + $0x18] sm:$0xff]  ;;  %v137_v30 = vld [vmem:[%s424_s7 + $0x10] sm:$0xff] }
   0xb   :  { %128 = vmatpush.msra.mxu2 %v104_v16  ;;  %v139_v23 = vld [vmem:[%s424_s7 + $0x20] sm:$0xff]  ;;  %v136_v31 = vld [vmem:[%s424_s7 + $0x8] sm:$0xff] }
   0xc   :  { %156 = vmatpush.msra.mxu3 %v143_v19  ;;  %v222_v25 = vld [vmem:[%s421_s4] ss:$0 sm:$0xff] }
   0xd   :  { %129 = vmatpush.msra.mxu2 %v103_v17  ;;  %v135_v32 = vld [vmem:[%s424_s7] sm:$0xff] }
   0xe   :  { %157 = vmatpush.msra.mxu3 %v142_v20  ;;  %v223_v33 = vld [vmem:[%s423_s6] ss:$0 sm:$0xff]  ;;  %s279_s6 = smov [#allocation4]  }
   0xf   :  { %s199_s7 = sshll.u32 %s279_s6, 4  ;;  %s200_s7 = int_to_ptr.vmem [resolvable:$true] %s199_s7 }
  0x10   :  { %158 = vmatpush.msra.mxu3 %v141_v21 }
  0x12   :  { %159 = vmatpush.msra.mxu3 %v140_v22 }
  0x14   :  { %160 = vmatpush.msra.mxu3 %v139_v23 }
  0x16   :  { %161 = vmatpush.msra.mxu3 %v138_v24 }
  0x18   :  { %162 = vmatpush.msra.mxu3 %v137_v30 }
  0x1a   :  { %163 = vmatpush.msra.mxu3 %v136_v31 }
  0x1c   :  { %164 = vmatpush.msra.mxu3 %v135_v32 }
  0x86   :  { %v63_v11 = vpop.f32.mrf.mxu0 }
  0x87   :  { %v64_v12 = vadd.f32 %v221_v10, %v63_v11 }
  0x89   :  { %v67_v13 = vmul.f32 0.2, %v64_v12  ;;  %vm66_vm1 = vcmp.ge.f32.partialorder %v64_v12, 0.0 }
  0x8b   :  { %v68_v14 = vsel %vm66_vm1, %v64_v12, %v67_v13 }
  0x8c   :  { %216 = vmatmul.msk.f32.vlgmr.msra.gmra.mxu1 %vm42_vm0, %v68_v14 }
 0x109   :  { %v97_v26 = vpop.f32.mrf.mxu1 }
 0x10a   :  { %v98_v27 = vadd.f32 %v222_v25, %v97_v26 }
 0x10c   :  { %v101_v28 = vmul.f32 0.2, %v98_v27  ;;  %vm100_vm2 = vcmp.ge.f32.partialorder %v98_v27, 0.0 }
 0x10e   :  { %v102_v29 = vsel %vm100_vm2, %v98_v27, %v101_v28 }
 0x10f   :  { %217 = vmatmul.msk.f32.vlgmr.msra.gmra.mxu2 %vm42_vm0, %v102_v29 }
 0x192   :  { %v131_v34 = vpop.f32.mrf.mxu2 }
 0x193   :  { %v132_v35 = vadd.f32 %v223_v33, %v131_v34 }
 0x195   :  { %v134_v36 = vmul.f32 %v132_v35, %v132_v35  ;;  %180 = vst.msk [vmem:[#allocation2] sm:$0x3] %vm179_vm3, %v132_v35 }
 0x196   :  { %193 = dma.vmem_to_hbm [thread:$0]  %s189_s13, 32, %s191_s12, [#allocation3]  }
 0x197   :  { %218 = vmatmul.msk.f32.vlgmr.msra.gmra.mxu3 %vm145_vm4, %v134_v36 }
 0x21a   :  { %v166_v37 = vpop.f32.mrf.mxu3 }
 0x21b   :  { %v167_v38 = vadd.f32 1e-08, %v166_v37 }
 0x21d   :  { %224 = vrsqrt.f32 %v167_v38  ;;  %vm175_vm6 = vweird.f32 %v167_v38 }
 0x223   :  { %v225_v39 = vpop.eup %224 }
 0x224   :  { %v170_v40 = vmul.f32 %v225_v39, %v167_v38  ;;  %vm176_vm5 = vweird.f32 %v225_v39 }
 0x225   :  { %vm177_vm8 = vmor %vm175_vm6, %vm176_vm5 }
 0x226   :  { %v171_v41 = vmul.f32 %v225_v39, %v170_v40 }
 0x228   :  { %v172_v42 = vmul.f32 0.5, %v171_v41 }
 0x22a   :  { %v173_v43 = vsub.f32 1.5, %v172_v42 }
 0x22c   :  { %v174_v44 = vmul.f32 %v225_v39, %v173_v43 }
 0x22e   :  { %v178_v45 = vsel %vm177_vm8, %v225_v39, %v174_v44 }
 0x22f   :  { %182 = vst.msk [vmem:[#allocation4] sm:$0x3] %vm181_vm7, %v178_v45 }
 0x230   :  { %204 = dma.vmem_to_hbm [thread:$0]  %s200_s7, 32, %s202_s8, [#allocation5]  }
 0x231   :  { %274 = dma.done.wait [#allocation3], 32  }
 0x232   :  { %275 = vsyncadd [#allocation3], 4294967264 }
 0x233   :  { %276 = dma.done.wait [#allocation5], 32  }
 0x234   :  { %277 = vsyncadd [#allocation5], 4294967264 }
 0x235   :  { %213 = vsyncpa [#allocation3], 1 }
 0x236   :  { %214 = vsyncpa [#allocation5], 1 }

</bundles_post_ra>
